<compile_context>
chip_gen: v6e
topology: v6e:2x2x1
jax: 0.10.0
libtpu: 0.0.40
codegen_flags: <defaults>
</compile_context>

<pallas_src>
import jax
import jax.numpy as jnp
from jax.experimental import pallas as pl
from jax.experimental.pallas import tpu as pltpu


_LANES = 1024                       # slab width: 8 x 128 -> unmasked full-width vst
_MAX_BLOCK_BYTES = 4 * 1024 * 1024  # 4 MiB per block (1024 f32 rows)
_VMEM_LIMIT_BYTES = 40 * 1024 * 1024  # room for 4 x 4 MiB buffers everywhere


def _sublane_granularity(dtype):
    """Packed-sublane tile granularity for the second-minor dim."""
    itemsize = jnp.dtype(dtype).itemsize
    if itemsize >= 4:
        return 8
    if itemsize == 2:
        return 16
    return 32


def _swish_kernel(x_ref, o_ref):
    x = x_ref[...]
    # Compute natively for f32 / bf16 (VPU+EUP handle bf16 on v6e/v7x);
    # upcast everything else to f32.
    if x.dtype == jnp.float32 or x.dtype == jnp.bfloat16:
        xc = x
    else:
        xc = x.astype(jnp.float32)
    # sigmoid(x) = 0.5 * tanh(0.5 x) + 0.5 : one EUP op, exact.
    sig = 0.5 * jnp.tanh(0.5 * xc) + 0.5
    o_ref[...] = (xc * sig).astype(o_ref.dtype)


def _choose_block_rows(rows, itemsize, granularity):
    """Pick block row-count: big (<=4 MiB) blocks, but >=2 grid blocks when
    there is enough work (so both v7x TensorCores stream)."""
    if rows <= granularity:
        # Block equals the full first dim -> no (8,128) divisibility needed.
        return rows
    max_rows_by_bytes = max(granularity, _MAX_BLOCK_BYTES // (_LANES * itemsize))
    max_rows_by_bytes = (max_rows_by_bytes // granularity) * granularity
    # Target at least two blocks so the "parallel" axis shards across TCs.
    target = -(-rows // 2)
    target = ((target + granularity - 1) // granularity) * granularity
    return min(max_rows_by_bytes, target)


def swish(x):
    """Swish activation: x * sigmoid(x). Works on any shape/dtype."""
    orig_shape = x.shape
    orig_dtype = x.dtype
    n = x.size
    if n == 0:
        return x

    itemsize = jnp.dtype(orig_dtype).itemsize
    gran = _sublane_granularity(orig_dtype)

    flat = x.reshape(-1)
    rows = -(-n // _LANES)          # cdiv
    padded_n = rows * _LANES
    needs_pad = padded_n != n
    if needs_pad:
        # Only up to 1023 padded elements; the aligned common case skips this.
        # TODO(synk): for large frequently-ragged inputs, mask the tail store
        # in-kernel instead of the pad + slice round-trip.
        flat = jnp.pad(flat, (0, padded_n - n))
    x2d = flat.reshape(rows, _LANES)

    block_rows = _choose_block_rows(rows, itemsize, gran)
    grid = (pl.cdiv(rows, block_rows),)  # partial last block is masked by Pallas

    cost = pl.CostEstimate(
        flops=int(4 * padded_n),
        transcendentals=int(padded_n),
        bytes_accessed=int(2 * padded_n * itemsize),
    )

    out2d = pl.pallas_call(
        _swish_kernel,
        out_shape=jax.ShapeDtypeStruct((rows, _LANES), orig_dtype),
        grid_spec=pltpu.PrefetchScalarGridSpec(
            num_scalar_prefetch=0,
            grid=grid,
            in_specs=[pl.BlockSpec((block_rows, _LANES), lambda i: (i, 0))],
            out_specs=pl.BlockSpec((block_rows, _LANES), lambda i: (i, 0)),
        ),
        compiler_params=pltpu.CompilerParams(
            dimension_semantics=("parallel",),      # shards across TCs on v7x
            vmem_limit_bytes=_VMEM_LIMIT_BYTES,     # 4 x 4 MiB buffers fit on all gens
        ),
        cost_estimate=cost,
    )(x2d)

    out = out2d.reshape(-1)
    if needs_pad:
        out = out[:n]
    return out.reshape(orig_shape)


if __name__ == "__main__":
    key = jax.random.PRNGKey(0)
    k1, k2, k3, k4 = jax.random.split(key, 4)

    # Typical conv-activation shape (NCHW) for this module.
    x = jax.random.normal(k1, (2, 4, 16, 16), dtype=jnp.float32)
    y = jax.block_until_ready(swish(x))
    ref = x * jax.nn.sigmoid(x)
    assert y.shape == x.shape and y.dtype == x.dtype
    assert jnp.allclose(y, ref, atol=2e-3, rtol=2e-3)

    # Larger aligned case: no padding, multi-block parallel grid.
    x2 = jax.random.normal(k2, (4, 8, 32, 128), dtype=jnp.float32)
    y2 = jax.block_until_ready(swish(x2))
    ref2 = x2 * jax.nn.sigmoid(x2)
    assert jnp.allclose(y2, ref2, atol=2e-3, rtol=2e-3)

    # Ragged case: minimal (<1024-element) padding path.
    x3 = jax.random.normal(k3, (3, 5, 7, 11), dtype=jnp.float32)
    y3 = jax.block_until_ready(swish(x3))
    ref3 = x3 * jax.nn.sigmoid(x3)
    assert jnp.allclose(y3, ref3, atol=2e-3, rtol=2e-3)

    # bf16 native-compute path (loose tolerance: bf16 math).
    x4 = jax.random.normal(k4, (2, 4, 16, 16), dtype=jnp.bfloat16)
    y4 = jax.block_until_ready(swish(x4))
    ref4 = (x4.astype(jnp.float32) * jax.nn.sigmoid(x4.astype(jnp.float32)))
    assert y4.dtype == jnp.bfloat16
    assert jnp.allclose(y4.astype(jnp.float32), ref4, atol=5e-2, rtol=5e-2)

    print("KERNEL_OK")
</pallas_src>

<mosaic_0001>
module attributes {stable_mosaic.version = 11 : i64} {
  func.func @_swish_kernel(%arg0: i32, %arg1: memref<2x1024xf32, #tpu.memory_space<vmem>>, %arg2: memref<2x1024xf32, #tpu.memory_space<vmem>>) attributes {dimension_semantics = [#tpu.dimension_semantics<parallel>], iteration_bounds = array<i64: 1>, scalar_prefetch = 0 : i64, scratch_operands = 0 : i64, tpu.core_type = #tpu.core_type<tc>, window_params = [{transform_indices = @transform_0, window_bounds = array<i64: 2, 1024>}, {transform_indices = @transform_1, window_bounds = array<i64: 2, 1024>}]} {
    %c0 = arith.constant 0 : index
    %c0_0 = arith.constant 0 : index
    %0 = vector.load %arg1[%c0, %c0_0] : memref<2x1024xf32, #tpu.memory_space<vmem>>, vector<2x1024xf32>
    %cst = arith.constant 5.000000e-01 : f32
    %1 = vector.broadcast %cst : f32 to vector<2x1024xf32>
    %2 = arith.mulf %1, %0 : vector<2x1024xf32>
    %3 = math.tanh %2 : vector<2x1024xf32>
    %cst_1 = arith.constant 5.000000e-01 : f32
    %4 = vector.broadcast %cst_1 : f32 to vector<2x1024xf32>
    %5 = arith.mulf %4, %3 : vector<2x1024xf32>
    %cst_2 = arith.constant 5.000000e-01 : f32
    %6 = vector.broadcast %cst_2 : f32 to vector<2x1024xf32>
    %7 = arith.addf %5, %6 : vector<2x1024xf32>
    %8 = arith.mulf %0, %7 : vector<2x1024xf32>
    %c0_3 = arith.constant 0 : index
    %c0_4 = arith.constant 0 : index
    %9 = vector.load %arg2[%c0_3, %c0_4] : memref<2x1024xf32, #tpu.memory_space<vmem>>, vector<2x1024xf32>
    tpu.vector_store %arg2[%c0_3, %c0_4], %8 {strides = array<i32>} : memref<2x1024xf32, #tpu.memory_space<vmem>>, vector<2x1024xf32>,
    return
  }
  func.func @transform_0(%arg0: i32) -> (i32, i32) {
    %c0_i32 = arith.constant 0 : i32
    %c0_i32_0 = arith.constant 0 : i32
    return %arg0, %c0_i32 : i32, i32
  }
  func.func @transform_1(%arg0: i32) -> (i32, i32) {
    %c0_i32 = arith.constant 0 : i32
    %c0_i32_0 = arith.constant 0 : i32
    return %arg0, %c0_i32 : i32, i32
  }
}

</mosaic_0001>

<bundles_post_ra>
// kernel: tpu_custom_call.1
= control target key start
LH: loop header
LB: loop body
LE: loop exit
PB: predicated region body
PF: predicated region fallthrough
CT: control target
= control target key end

     0   :  { %6 = vsyncpa [#allocation3], 0  ;;  %s118_s0 = inlined_call_operand.hbm [shape: f32[2,1024], index: 0, kind: input, shape index: {}]   ;;  %s119_s1 = inlined_call_operand.hbm [shape: f32[2,1024], index: 1, kind: output, shape index: {}]  }
   0x1   :  { %7 = vsyncpa [#allocation4], 0  ;;  %s100_s6 = smov [#allocation2]  }
   0x2   :  { %s14_s7 = sshll.u32 %s100_s6, 4  ;;  %s15_s7 = int_to_ptr.vmem [resolvable:$true] %s14_s7 }
   0x3   :  { %s64_s8 = scalar_lea.vmem %s15_s7, 256  ;;  %p69_p1 = scmp.lt.s32.totalorder %s15_s7, %s15_s7 }
   0x4   :  { %p65_p0 = scmp.ne.s32.totalorder %s15_s7, %s64_s8  ;;  %p70_p2 = scmp.lt.s32.totalorder %s64_s8, %s64_s8 }
   0x6   :  { %p71_p3 = por %p70_p2, %p69_p1 }
   0x8   :  { %p72_p4 = pnand %p71_p3, %p65_p0 }
   0xa   :  { %75 = shalt.err (!%p72_p4)
}
   0xb   :  { %17 = dma.hbm_to_vmem [thread:$0]  %s118_s0, 256, %s15_s7, [#allocation3]  }
   0xc   :  { %96 = dma.done.wait [#allocation3], 256  }
   0xd   :  { %97 = vsyncadd [#allocation3], 4294967040  ;;  %v21_v0 = vld [vmem:[#allocation2] sm:$0xff]  ;;  %v22_v1 = vld [vmem:[#allocation2 + $0x8] sm:$0xff]  ;;  %s101_s11 = smov [#allocation5]  }
   0xe   :  { %v23_v2 = vmul.f32 0.5, %v21_v0  ;;  %v24_v3 = vmul.f32 0.5, %v22_v1  ;;  %s41_s12 = sshll.u32 %s101_s11, 4  ;;  %s42_s12 = int_to_ptr.vmem [resolvable:$true] %s41_s12 }
   0xf   :  { %s76_s0 = scalar_lea.vmem %s42_s12, 256  ;;  %p81_p6 = scmp.lt.s32.totalorder %s42_s12, %s42_s12 }
  0x10   :  { %52 = vtanh.f32 %v23_v2  ;;  %p77_p5 = scmp.ne.s32.totalorder %s42_s12, %s76_s0  ;;  %p82_p7 = scmp.lt.s32.totalorder %s76_s0, %s76_s0 }
  0x11   :  { %54 = vtanh.f32 %v24_v3 }
  0x12   :  { %p83_p8 = por %p82_p7, %p81_p6 }
  0x14   :  { %p84_p9 = pnand %p83_p8, %p77_p5 }
  0x1d   :  { %v53_v4 = vpop.eup %52 }
  0x1e   :  { %v55_v5 = vpop.eup %54  ;;  %v27_v6 = vmul.f32 0.5, %v53_v4 }
  0x1f   :  { %v28_v7 = vmul.f32 0.5, %v55_v5 }
  0x20   :  { %v29_v8 = vadd.f32 0.5, %v27_v6 }
  0x21   :  { %v30_v9 = vadd.f32 0.5, %v28_v7 }
  0x22   :  { %v31_v10 = vmul.f32 %v29_v8, %v21_v0 }
  0x23   :  { %v32_v11 = vmul.f32 %v30_v9, %v22_v1 }
  0x24   :  { %33 = vst [vmem:[#allocation5] sm:$0xff] %v31_v10 }
  0x25   :  { %34 = vst [vmem:[#allocation5 + $0x8] sm:$0xff] %v32_v11 }
  0x26   :  { %87 = shalt.err (!%p84_p9)
}
  0x27   :  { %44 = dma.vmem_to_hbm [thread:$0]  %s42_s12, 256, %s119_s1, [#allocation4]  }
  0x28   :  { %98 = dma.done.wait [#allocation4], 256  }
  0x29   :  { %99 = vsyncadd [#allocation4], 4294967040 }
  0x2a   :  { %48 = vsyncpa [#allocation3], 1 }
  0x2b   :  { %49 = vsyncpa [#allocation4], 1 }

</bundles_post_ra>
